<compile_context>
chip_gen: v7x
topology: tpu7x:2x2x1
jax: 0.10.0
libtpu: 0.0.40
codegen_flags: <defaults>
</compile_context>

<pallas_src>
import functools

import jax
import jax.numpy as jnp
from jax import lax
from jax.experimental import pallas as pl
from jax.experimental.pallas import tpu as pltpu

_LANES = 128
_SUBLANES = 8
_SUB_ROWS = 512          # rows per in-kernel accumulation chunk (256 KiB f32)
_PER_INPUT_BLOCK_BYTES = 4 << 20   # ~4 MiB DMA block per input


def _default_num_parallel():
    """2 on chips with two TensorCores behind one device (v7x, v4/v5p megacore),
    1 on single-TC chips (v5e/v6e). Conservative fallback is 1."""
    try:
        kind = jax.devices()[0].device_kind.lower()
    except Exception:
        return 1
    if any(tag in kind for tag in ("v4", "v5p", "7x", "tpu7", "tpu v7")):
        return 2
    return 1


def _dice_partial_kernel(l_ref, t_ref, acc_ref, *, tile_rows, sub_rows, rows,
                         blocks_per_core, b_total, need_mask):
    # acc_ref: output block (1, 3, 8, 128) f32, constant across the reduction
    # axis -> VMEM-resident per-lane accumulator for this parallel slot.
    p = pl.program_id(0)   # parallel axis (sharded across TCs on v7x/v4/v5p)
    j = pl.program_id(1)   # arbitrary (reduction) axis

    @pl.when(j == 0)
    def _init():
        acc_ref[...] = jnp.zeros_like(acc_ref)

    n_sub = tile_rows // sub_rows
    g = sub_rows // _SUBLANES

    def accum_chunk(c, mask_limit=None):
        start = c * sub_rows
        if not isinstance(start, int):
            start = pl.multiple_of(start, sub_rows)
        l = l_ref[pl.ds(start, sub_rows), :].astype(jnp.float32)
        t = t_ref[pl.ds(start, sub_rows), :].astype(jnp.float32)
        if mask_limit is not None:
            # Rows at/after `mask_limit` (within this block) are padding /
            # duplicated clamped blocks -> zero them before accumulating.
            row_ids = lax.broadcasted_iota(jnp.int32, (sub_rows, _LANES), 0)
            m = (row_ids + c * sub_rows) < mask_limit
            l = jnp.where(m, l, 0.0)
            t = jnp.where(m, t, 0.0)
        # Pure-VPU accumulation into per-lane partials: the reshape keeps the
        # (sublane, lane) minor dims intact, so axis-0 sums are vreg adds.
        acc_ref[0, 0] += (l * t).reshape(g, _SUBLANES, _LANES).sum(axis=0)
        acc_ref[0, 1] += l.reshape(g, _SUBLANES, _LANES).sum(axis=0)
        acc_ref[0, 2] += t.reshape(g, _SUBLANES, _LANES).sum(axis=0)

    def accum_all(mask_limit=None):
        if n_sub == 1:
            accum_chunk(0, mask_limit)
        else:
            # Real loop (not Python-unrolled) keeps sub-chunk temporaries'
            # live ranges bounded -> small VMEM footprint for big DMA tiles.
            def body(c, carry):
                accum_chunk(c, mask_limit)
                return carry
            lax.fori_loop(0, n_sub, body, 0)

    if not need_mask:
        accum_all()
    else:
        rb = p * blocks_per_core + j   # logical block index (pre-clamp)

        @pl.when(rb < b_total - 1)
        def _interior():               # unmasked fast path
            accum_all()

        @pl.when(rb >= b_total - 1)
        def _boundary():               # last real block + clamped duplicates
            accum_all(mask_limit=rows - rb * tile_rows)


def dice_loss(logits, targets, smooth=1e-6, *, tile_rows=None, num_parallel=None):
    assert logits.shape == targets.shape
    n = logits.size

    # Flatten without copies, keep native dtype (cast to f32 inside kernel).
    lf = logits.reshape(-1)
    tf = targets.reshape(-1)

    rows = n // _LANES
    n_main = rows * _LANES

    # Ragged tail (< 128 elements) only exists when n % 128 != 0: plain jnp.
    if n_main < n:
        tail_l = lf[n_main:].astype(jnp.float32)
        tail_t = tf[n_main:].astype(jnp.float32)
        tail_inter = jnp.sum(tail_l * tail_t)
        tail_sl = jnp.sum(tail_l)
        tail_st = jnp.sum(tail_t)
    else:
        tail_inter = jnp.float32(0.0)
        tail_sl = jnp.float32(0.0)
        tail_st = jnp.float32(0.0)

    if rows == 0:
        inter, sl, st = tail_inter, tail_sl, tail_st
    else:
        if n_main == n:
            lm = lf.reshape(rows, _LANES)          # free reshape, zero copy
            tm = tf.reshape(rows, _LANES)
        else:
            # TODO(synk): n % 128 != 0 forces a sliced copy of the main body;
            # arrange 128-multiple tensor sizes upstream to avoid it.
            lm = lf[:n_main].reshape(rows, _LANES)
            tm = tf[:n_main].reshape(rows, _LANES)

        l_item = jnp.dtype(logits.dtype).itemsize
        t_item = jnp.dtype(targets.dtype).itemsize

        # ---- dtype-aware tile sizing (~4 MiB per input block) ----
        if tile_rows is None:
            tile_rows = _PER_INPUT_BLOCK_BYTES // (_LANES * max(l_item, t_item, 1))
        tr = min(int(tile_rows), pl.cdiv(rows, _SUBLANES) * _SUBLANES)
        tr = max(_SUBLANES, (tr // _SUBLANES) * _SUBLANES)
        if tr > _SUB_ROWS:
            tr = (tr // _SUB_ROWS) * _SUB_ROWS     # inner chunk must divide tile
            sub = _SUB_ROWS
        else:
            sub = tr

        b_total = pl.cdiv(rows, tr)

        if num_parallel is None:
            num_parallel = _default_num_parallel()
        p_count = max(1, min(int(num_parallel), b_total))
        blocks_per_core = pl.cdiv(b_total, p_count)
        need_mask = (b_total * tr != rows) or (p_count * blocks_per_core != b_total)

        def in_index(p, j):
            rb = p * blocks_per_core + j
            if p_count * blocks_per_core != b_total:
                rb = jnp.minimum(rb, b_total - 1)  # never DMA out of bounds
            return (rb, 0)

        # Double-buffered inputs + chunk temporaries; raise the scoped VMEM
        # limit so 4 MiB/input blocks also compile on v5e (16 MiB default).
        block_bytes = tr * _LANES * (l_item + t_item)
        vmem_limit = max(16 << 20, int(2 * block_bytes) + (8 << 20))

        partials = pl.pallas_call(
            functools.partial(
                _dice_partial_kernel,
                tile_rows=tr,
                sub_rows=sub,
                rows=rows,
                blocks_per_core=blocks_per_core,
                b_total=b_total,
                need_mask=need_mask,
            ),
            out_shape=jax.ShapeDtypeStruct((p_count, 3, _SUBLANES, _LANES),
                                           jnp.float32),
            grid_spec=pltpu.PrefetchScalarGridSpec(
                num_scalar_prefetch=0,
                grid=(p_count, blocks_per_core),
                in_specs=[
                    pl.BlockSpec((tr, _LANES), in_index),
                    pl.BlockSpec((tr, _LANES), in_index),
                ],
                out_specs=pl.BlockSpec((1, 3, _SUBLANES, _LANES),
                                       lambda p, j: (p, 0, 0, 0)),
            ),
            compiler_params=pltpu.CompilerParams(
                dimension_semantics=("parallel", "arbitrary"),
                vmem_limit_bytes=vmem_limit,
            ),
        )(lm, tm)

        inter = jnp.sum(partials[:, 0]) + tail_inter
        sl = jnp.sum(partials[:, 1]) + tail_sl
        st = jnp.sum(partials[:, 2]) + tail_st

    dice = (2.0 * inter + smooth) / (sl + st + smooth)
    return (1.0 - dice).astype(jnp.float32)


def dice_loss_ref(logits, targets, smooth=1e-6):
    logits = logits.astype(jnp.float32)
    targets = targets.astype(jnp.float32)
    inter = jnp.sum(logits * targets)
    dice = (2.0 * inter + smooth) / (jnp.sum(logits) + jnp.sum(targets) + smooth)
    return 1.0 - dice


if __name__ == "__main__":
    key = jax.random.PRNGKey(0)
    k1, k2, k3, k4 = jax.random.split(key, 4)

    # Primary shape: segmentation-style NCHW logits / binary targets.
    x_shape = (2, 4, 16, 16)
    logits = jax.nn.sigmoid(jax.random.normal(k1, x_shape, dtype=jnp.float32))
    targets = (jax.random.uniform(k2, x_shape) > 0.5).astype(jnp.float32)

    loss = jax.block_until_ready(dice_loss(logits, targets))
    ref = dice_loss_ref(logits, targets)
    assert jnp.allclose(loss, ref, atol=1e-5, rtol=1e-5), (loss, ref)

    # Multi-step reduction grid (exercises the resident accumulator path).
    loss_small_tile = jax.block_until_ready(dice_loss(logits, targets, tile_rows=8))
    assert jnp.allclose(loss_small_tile, ref, atol=1e-5, rtol=1e-5), (loss_small_tile, ref)

    # Ragged row count (exercises boundary-block masking; n % 128 == 0 so no copies).
    y_shape = (2, 3, 16, 16)
    logits2 = jax.nn.sigmoid(jax.random.normal(k3, y_shape, dtype=jnp.float32))
    targets2 = (jax.random.uniform(k4, y_shape) > 0.5).astype(jnp.float32)
    loss2 = jax.block_until_ready(dice_loss(logits2, targets2))
    ref2 = dice_loss_ref(logits2, targets2)
    assert jnp.allclose(loss2, ref2, atol=1e-5, rtol=1e-5), (loss2, ref2)

    print("KERNEL_OK")
</pallas_src>

<mosaic_0001>
module attributes {stable_mosaic.version = 11 : i64} {
  func.func @_dice_partial_kernel(%arg0: i32, %arg1: i32, %arg2: memref<16x128xf32, #tpu.memory_space<vmem>>, %arg3: memref<16x128xf32, #tpu.memory_space<vmem>>, %arg4: memref<1x3x8x128xf32, #tpu.memory_space<vmem>>) attributes {dimension_semantics = [#tpu.dimension_semantics<parallel>, #tpu.dimension_semantics<arbitrary>], iteration_bounds = array<i64: 1, 1>, scalar_prefetch = 0 : i64, scratch_operands = 0 : i64, tpu.core_type = #tpu.core_type<tc>, window_params = [{transform_indices = @transform_0, window_bounds = array<i64: 16, 128>}, {transform_indices = @transform_1, window_bounds = array<i64: 16, 128>}, {transform_indices = @transform_2, window_bounds = array<i64: 1, 3, 8, 128>}]} {
    %c0_i32 = arith.constant 0 : i32
    %0 = arith.cmpi eq, %arg1, %c0_i32 : i32
    %1 = arith.extui %0 : i1 to i32
    %c0_i32_0 = arith.constant 0 : i32
    %2 = arith.cmpi ne, %1, %c0_i32_0 : i32
    scf.if %2 {
      %cst_28 = arith.constant 0.000000e+00 : f32
      %30 = vector.broadcast %cst_28 : f32 to vector<1x3x8x128xf32>
      %c0_29 = arith.constant 0 : index
      %c0_30 = arith.constant 0 : index
      %c0_31 = arith.constant 0 : index
      %c0_32 = arith.constant 0 : index
      %31 = vector.load %arg4[%c0_29, %c0_30, %c0_31, %c0_32] : memref<1x3x8x128xf32, #tpu.memory_space<vmem>>, vector<1x3x8x128xf32>
      tpu.vector_store %arg4[%c0_29, %c0_30, %c0_31, %c0_32], %30 {strides = array<i32>} : memref<1x3x8x128xf32, #tpu.memory_space<vmem>>, vector<1x3x8x128xf32>,
    } else {
    }
    %c0 = arith.constant 0 : index
    %c0_1 = arith.constant 0 : index
    %3 = vector.load %arg2[%c0, %c0_1] : memref<16x128xf32, #tpu.memory_space<vmem>>, vector<16x128xf32>
    %c0_2 = arith.constant 0 : index
    %c0_3 = arith.constant 0 : index
    %4 = vector.load %arg3[%c0_2, %c0_3] : memref<16x128xf32, #tpu.memory_space<vmem>>, vector<16x128xf32>
    %c0_4 = arith.constant 0 : index
    %c0_5 = arith.constant 0 : index
    %c0_6 = arith.constant 0 : index
    %c0_7 = arith.constant 0 : index
    %5 = vector.load %arg4[%c0_4, %c0_5, %c0_6, %c0_7] : memref<1x3x8x128xf32, #tpu.memory_space<vmem>>, vector<1x1x8x128xf32>
    %6 = vector.shape_cast %5 : vector<1x1x8x128xf32> to vector<8x128xf32>
    %7 = arith.mulf %3, %4 : vector<16x128xf32>
    %8 = vector.shape_cast %7 : vector<16x128xf32> to vector<2x8x128xf32>
    %cst = arith.constant dense<0.000000e+00> : vector<8x128xf32>
    %9 = vector.multi_reduction <add>, %8, %cst [0] : vector<2x8x128xf32> to vector<8x128xf32>
    %10 = arith.addf %6, %9 : vector<8x128xf32>
    %c0_8 = arith.constant 0 : index
    %c0_9 = arith.constant 0 : index
    %c0_10 = arith.constant 0 : index
    %c0_11 = arith.constant 0 : index
    %11 = vector.load %arg4[%c0_8, %c0_9, %c0_10, %c0_11] : memref<1x3x8x128xf32, #tpu.memory_space<vmem>>, vector<1x1x8x128xf32>
    %12 = vector.shape_cast %11 : vector<1x1x8x128xf32> to vector<8x128xf32>
    %13 = vector.shape_cast %10 : vector<8x128xf32> to vector<1x1x8x128xf32>
    tpu.vector_store %arg4[%c0_8, %c0_9, %c0_10, %c0_11], %13 {strides = array<i32>} : memref<1x3x8x128xf32, #tpu.memory_space<vmem>>, vector<1x1x8x128xf32>,
    %c0_12 = arith.constant 0 : index
    %c1 = arith.constant 1 : index
    %c0_13 = arith.constant 0 : index
    %c0_14 = arith.constant 0 : index
    %14 = vector.load %arg4[%c0_12, %c1, %c0_13, %c0_14] : memref<1x3x8x128xf32, #tpu.memory_space<vmem>>, vector<1x1x8x128xf32>
    %15 = vector.shape_cast %14 : vector<1x1x8x128xf32> to vector<8x128xf32>
    %16 = vector.shape_cast %3 : vector<16x128xf32> to vector<2x8x128xf32>
    %cst_15 = arith.constant dense<0.000000e+00> : vector<8x128xf32>
    %17 = vector.multi_reduction <add>, %16, %cst_15 [0] : vector<2x8x128xf32> to vector<8x128xf32>
    %18 = arith.addf %15, %17 : vector<8x128xf32>
    %c0_16 = arith.constant 0 : index
    %c1_17 = arith.constant 1 : index
    %c0_18 = arith.constant 0 : index
    %c0_19 = arith.constant 0 : index
    %19 = vector.load %arg4[%c0_16, %c1_17, %c0_18, %c0_19] : memref<1x3x8x128xf32, #tpu.memory_space<vmem>>, vector<1x1x8x128xf32>
    %20 = vector.shape_cast %19 : vector<1x1x8x128xf32> to vector<8x128xf32>
    %21 = vector.shape_cast %18 : vector<8x128xf32> to vector<1x1x8x128xf32>
    tpu.vector_store %arg4[%c0_16, %c1_17, %c0_18, %c0_19], %21 {strides = array<i32>} : memref<1x3x8x128xf32, #tpu.memory_space<vmem>>, vector<1x1x8x128xf32>,
    %c0_20 = arith.constant 0 : index
    %c2 = arith.constant 2 : index
    %c0_21 = arith.constant 0 : index
    %c0_22 = arith.constant 0 : index
    %22 = vector.load %arg4[%c0_20, %c2, %c0_21, %c0_22] : memref<1x3x8x128xf32, #tpu.memory_space<vmem>>, vector<1x1x8x128xf32>
    %23 = vector.shape_cast %22 : vector<1x1x8x128xf32> to vector<8x128xf32>
    %24 = vector.shape_cast %4 : vector<16x128xf32> to vector<2x8x128xf32>
    %cst_23 = arith.constant dense<0.000000e+00> : vector<8x128xf32>
    %25 = vector.multi_reduction <add>, %24, %cst_23 [0] : vector<2x8x128xf32> to vector<8x128xf32>
    %26 = arith.addf %23, %25 : vector<8x128xf32>
    %c0_24 = arith.constant 0 : index
    %c2_25 = arith.constant 2 : index
    %c0_26 = arith.constant 0 : index
    %c0_27 = arith.constant 0 : index
    %27 = vector.load %arg4[%c0_24, %c2_25, %c0_26, %c0_27] : memref<1x3x8x128xf32, #tpu.memory_space<vmem>>, vector<1x1x8x128xf32>
    %28 = vector.shape_cast %27 : vector<1x1x8x128xf32> to vector<8x128xf32>
    %29 = vector.shape_cast %26 : vector<8x128xf32> to vector<1x1x8x128xf32>
    tpu.vector_store %arg4[%c0_24, %c2_25, %c0_26, %c0_27], %29 {strides = array<i32>} : memref<1x3x8x128xf32, #tpu.memory_space<vmem>>, vector<1x1x8x128xf32>,
    return
  }
  func.func @transform_0(%arg0: i32, %arg1: i32) -> (i32, i32) {
    %c1_i32 = arith.constant 1 : i32
    %0 = arith.muli %arg0, %c1_i32 : i32
    %1 = arith.addi %0, %arg1 : i32
    %c0_i32 = arith.constant 0 : i32
    %c0_i32_0 = arith.constant 0 : i32
    return %1, %c0_i32 : i32, i32
  }
  func.func @transform_1(%arg0: i32, %arg1: i32) -> (i32, i32) {
    %c1_i32 = arith.constant 1 : i32
    %0 = arith.muli %arg0, %c1_i32 : i32
    %1 = arith.addi %0, %arg1 : i32
    %c0_i32 = arith.constant 0 : i32
    %c0_i32_0 = arith.constant 0 : i32
    return %1, %c0_i32 : i32, i32
  }
  func.func @transform_2(%arg0: i32, %arg1: i32) -> (i32, i32, i32, i32) {
    %c0_i32 = arith.constant 0 : i32
    %c0_i32_0 = arith.constant 0 : i32
    %c0_i32_1 = arith.constant 0 : i32
    %c0_i32_2 = arith.constant 0 : i32
    return %arg0, %c0_i32, %c0_i32_0, %c0_i32_1 : i32, i32, i32, i32
  }
}

</mosaic_0001>

<bundles_post_ra>
// kernel: tpu_custom_call.1
= control target key start
LH: loop header
LB: loop body
LE: loop exit
PB: predicated region body
PF: predicated region fallthrough
CT: control target
= control target key end

     0   :  { %7 = vsyncpa [#allocation3], 0  ;;  %s240_s0 = inlined_call_operand.hbm [shape: f32[16,128], index: 0, kind: input, shape index: {}]   ;;  %s241_s1 = inlined_call_operand.hbm [shape: f32[16,128], index: 1, kind: input, shape index: {}]   ;;  %s242_s2 = inlined_call_operand.hbm [shape: f32[1,3,8,128], index: 2, kind: output, shape index: {}]  }
   0x1   :  { %8 = vsyncpa [#allocation6], 0 }
   0x2   :  { %9 = vsyncpa [#allocation4], 0  ;;  %s175_s9 = smov [#allocation2]   ;;  %s103_s13 = scalar_lea.hbm %s240_s0, 256 }
   0x3   :  { %s19_s10 = sshll.u32 %s175_s9, 4  ;;  %p104_p0 = scmp.ne.s32.totalorder %s240_s0, %s103_s13  ;;  %s20_s10 = int_to_ptr.vmem [resolvable:$true] %s19_s10 }
   0x4   :  { %p107_p1 = scmp.lt.u32.totalorder %s103_s13, %s240_s0 }
   0x6   :  { %p109_p2 = pnand %p107_p1, %p104_p0 }
   0x8   :  { %112 = shalt.err (!%p109_p2)
}
   0x9   :  { %s113_s18 = scalar_lea.vmem %s20_s10, 256  ;;  %p118_p4 = scmp.lt.s32.totalorder %s20_s10, %s20_s10 }
   0xa   :  { %p114_p3 = scmp.ne.s32.totalorder %s20_s10, %s113_s18  ;;  %p119_p5 = scmp.lt.s32.totalorder %s113_s18, %s113_s18 }
   0xc   :  { %p120_p6 = por %p119_p5, %p118_p4 }
   0xe   :  { %p121_p7 = pnand %p120_p6, %p114_p3 }
  0x10   :  { %124 = shalt.err (!%p121_p7)
}
  0x11   :  { %s176_s19 = smov 128   ;;  %s177_s20 = smov 8  }
  0x12   :  { %25 = dma.hbm_to_vmem [thread:$0]  %s240_s0, 256, %s20_s10, [#allocation3], %s176_s19, %s176_s19, %s177_s20  }
  0x13   :  { %s178_s23 = smov [#allocation5]   ;;  %s125_s27 = scalar_lea.hbm %s241_s1, 256 }
  0x14   :  { %s35_s24 = sshll.u32 %s178_s23, 4  ;;  %p126_p8 = scmp.ne.s32.totalorder %s241_s1, %s125_s27  ;;  %s36_s24 = int_to_ptr.vmem [resolvable:$true] %s35_s24 }
  0x15   :  { %p129_p9 = scmp.lt.u32.totalorder %s125_s27, %s241_s1 }
  0x17   :  { %p131_p10 = pnand %p129_p9, %p126_p8 }
  0x19   :  { %134 = shalt.err (!%p131_p10)
}
  0x1a   :  { %s135_s4 = scalar_lea.vmem %s36_s24, 256  ;;  %p140_p12 = scmp.lt.s32.totalorder %s36_s24, %s36_s24 }
  0x1b   :  { %p136_p11 = scmp.ne.s32.totalorder %s36_s24, %s135_s4  ;;  %p141_p13 = scmp.lt.s32.totalorder %s135_s4, %s135_s4 }
  0x1d   :  { %p142_p0 = por %p141_p13, %p140_p12 }
  0x1f   :  { %p143_p1 = pnand %p142_p0, %p136_p11 }
  0x21   :  { %146 = shalt.err (!%p143_p1)
}
  0x22   :  { %41 = dma.hbm_to_vmem [thread:$0]  %s241_s1, 256, %s36_s24, [#allocation6], %s176_s19, %s176_s19, %s177_s20  }
  0x23   :  { %169 = dma.done.wait [#allocation3], 256  }
  0x24   :  { %170 = vsyncadd [#allocation3], 4294967040 }
  0x25   :  { %171 = dma.done.wait [#allocation6], 256  }
  0x26   :  { %172 = vsyncadd [#allocation6], 4294967040  ;;  %v59_v0 = vld [vmem:[#allocation2] sm:$0xff]  ;;  %v60_v1 = vld [vmem:[#allocation2 + $0x8] sm:$0xff]  ;;  %s179_s6 = smov [#allocation7]  }
  0x27   :  { %v61_v2 = vld [vmem:[#allocation5] sm:$0xff]  ;;  %v62_v3 = vld [vmem:[#allocation5 + $0x8] sm:$0xff]  ;;  %v71_v5 = vadd.f32 %v60_v1, %v59_v0  ;;  %s84_s7 = sshll.u32 %s179_s6, 4  ;;  %s85_s7 = int_to_ptr.vmem [resolvable:$true] %s84_s7 }
  0x28   :  { %v64_v4 = vmul.f32 %v61_v2, %v59_v0  ;;  %v65_v6 = vmul.f32 %v62_v3, %v60_v1  ;;  %v76_v7 = vadd.f32 %v62_v3, %v61_v2  ;;  %s147_s1 = scalar_lea.vmem %s85_s7, 384  ;;  %p152_p3 = scmp.lt.s32.totalorder %s85_s7, %s85_s7 }
  0x29   :  { %73 = vst [vmem:[#allocation7 + $0x8] sm:$0xff] %v71_v5  ;;  %p148_p2 = scmp.ne.s32.totalorder %s85_s7, %s147_s1  ;;  %p153_p4 = scmp.lt.s32.totalorder %s147_s1, %s147_s1 }
  0x2a   :  { %v66_v8 = vadd.f32 %v65_v6, %v64_v4  ;;  %78 = vst [vmem:[#allocation7 + $0x10] sm:$0xff] %v76_v7 }
  0x2b   :  { %p154_p5 = por %p153_p4, %p152_p3 }
  0x2c   :  { %68 = vst [vmem:[#allocation7] sm:$0xff] %v66_v8 }
  0x2d   :  { %p155_p6 = pnand %p154_p5, %p148_p2 }
  0x2f   :  { %158 = shalt.err (!%p155_p6)
}
  0x30   :  { %s159_s10 = scalar_lea.hbm %s242_s2, 384 }
  0x31   :  { %p160_p7 = scmp.ne.s32.totalorder %s242_s2, %s159_s10  ;;  %p163_p8 = scmp.lt.u32.totalorder %s159_s10, %s242_s2 }
  0x33   :  { %p165_p9 = pnand %p163_p8, %p160_p7 }
  0x35   :  { %168 = shalt.err (!%p165_p9)
}
  0x36   :  { %90 = dma.vmem_to_hbm [thread:$0]  %s85_s7, 384, %s242_s2, [#allocation4], %s176_s19, %s176_s19, %s177_s20  }
  0x37   :  { %173 = dma.done.wait [#allocation4], 384  }
  0x38   :  { %174 = vsyncadd [#allocation4], 4294966912 }
  0x39   :  { %94 = vsyncpa [#allocation3], 1 }
  0x3a   :  { %95 = vsyncpa [#allocation6], 1 }
  0x3b   :  { %96 = vsyncpa [#allocation4], 1 }

</bundles_post_ra>
